<compile_context>
chip_gen: v6e
topology: v6e:2x2x1
jax: 0.10.0
libtpu: 0.0.40
codegen_flags: <defaults>
</compile_context>

<pallas_src>
import jax
import jax.numpy as jnp
from jax import lax
from jax.experimental import pallas as pl
from jax.experimental.pallas import tpu as pltpu


def final_block_kernel(x_ref, w_ref, b_ref, o_ref):
    x = x_ref[...]                     # (TB, in_features)
    w = w_ref[...]                     # (5, in_features) -- resident across steps
    b = b_ref[...]                     # (1, 5)           -- resident across steps
    # Contract x dim 1 with w dim 1: no in-kernel transpose, MXU-native.
    y = lax.dot_general(
        x, w,
        dimension_numbers=(((1,), (1,)), ((), ())),
        preferred_element_type=jnp.float32,
    )                                  # (TB, 5), f32 accumulation
    o_ref[...] = jax.nn.sigmoid(y + b).astype(o_ref.dtype)


def final_block(x, w, b, *, block_rows=512):
    """x: (B, in_features) f32, w: (5, in_features) f32, b: (5,) f32 -> (B, 5) f32.

    block_rows: batch tile size (rows per grid step). Must be a multiple of 8
    when it does not cover the whole batch. 512 rows x 32 feats x 4B = 64 KiB
    per x buffer -> trivially fits scoped VMEM on all generations while still
    amortizing the ~0.35us/step grid overhead.
    """
    B, in_features = x.shape
    out_features = w.shape[0]
    b2d = b.reshape(1, out_features)

    if B <= block_rows:
        tb = B                      # single full-extent tile (always legal)
    else:
        tb = block_rows
        assert tb % 8 == 0, "batch tile must be a multiple of 8"

    grid = (pl.cdiv(B, tb),)

    return pl.pallas_call(
        final_block_kernel,
        out_shape=jax.ShapeDtypeStruct((B, out_features), jnp.float32),
        grid=grid,
        in_specs=[
            # x streams through VMEM, tiled over the batch.
            pl.BlockSpec((tb, in_features), lambda i: (i, 0)),
            # W and b: constant block index -> resident in VMEM, no per-step DMA.
            pl.BlockSpec((out_features, in_features), lambda i: (0, 0)),
            pl.BlockSpec((1, out_features), lambda i: (0, 0)),
        ],
        out_specs=pl.BlockSpec((tb, out_features), lambda i: (i, 0)),
        compiler_params=pltpu.CompilerParams(
            # Batch rows are independent -> shard grid across TCs on v7x.
            dimension_semantics=("parallel",),
        ),
    )(x, w, b2d)


if __name__ == "__main__":
    key = jax.random.PRNGKey(0)
    in_features, out_features = 32, 5

    kx, kw, kb = jax.random.split(key, 3)
    # Deterministic init mimicking nn.Linear's uniform(-1/sqrt(in), 1/sqrt(in))
    bound = 1.0 / jnp.sqrt(jnp.float32(in_features))
    w = jax.random.uniform(kw, (out_features, in_features), jnp.float32, -bound, bound)
    b = jax.random.uniform(kb, (out_features,), jnp.float32, -bound, bound)

    # Small single-tile case (B <= block_rows).
    B = 8
    x = jax.random.normal(kx, (B, in_features), dtype=jnp.float32)
    out = jax.block_until_ready(final_block(x, w, b))
    ref = jax.nn.sigmoid(x @ w.T + b)
    assert out.shape == (B, out_features)
    assert jnp.allclose(out, ref, atol=1e-5, rtol=1e-5)

    # Small multi-tile case to exercise the pipelined batch grid.
    B2 = 64
    x2 = jax.random.normal(jax.random.PRNGKey(1), (B2, in_features), dtype=jnp.float32)
    out2 = jax.block_until_ready(final_block(x2, w, b, block_rows=16))
    ref2 = jax.nn.sigmoid(x2 @ w.T + b)
    assert out2.shape == (B2, out_features)
    assert jnp.allclose(out2, ref2, atol=1e-5, rtol=1e-5)

    print("KERNEL_OK")
</pallas_src>

<mosaic_0001>
module attributes {stable_mosaic.version = 11 : i64} {
  func.func @final_block_kernel(%arg0: i32, %arg1: memref<8x32xf32, #tpu.memory_space<vmem>>, %arg2: memref<5x32xf32, #tpu.memory_space<vmem>>, %arg3: memref<1x5xf32, #tpu.memory_space<vmem>>, %arg4: memref<8x5xf32, #tpu.memory_space<vmem>>) attributes {dimension_semantics = [#tpu.dimension_semantics<parallel>], iteration_bounds = array<i64: 1>, scalar_prefetch = 0 : i64, scratch_operands = 0 : i64, tpu.core_type = #tpu.core_type<tc>, window_params = [{transform_indices = @transform_0, window_bounds = array<i64: 8, 32>}, {pipeline_mode = #tpu.pipeline_mode<synchronous>, transform_indices = @transform_1, window_bounds = array<i64: 5, 32>}, {pipeline_mode = #tpu.pipeline_mode<synchronous>, transform_indices = @transform_2, window_bounds = array<i64: 1, 5>}, {transform_indices = @transform_3, window_bounds = array<i64: 8, 5>}]} {
    %c0 = arith.constant 0 : index
    %c0_0 = arith.constant 0 : index
    %0 = vector.load %arg1[%c0, %c0_0] : memref<8x32xf32, #tpu.memory_space<vmem>>, vector<8x32xf32>
    %c0_1 = arith.constant 0 : index
    %c0_2 = arith.constant 0 : index
    %1 = vector.load %arg2[%c0_1, %c0_2] : memref<5x32xf32, #tpu.memory_space<vmem>>, vector<5x32xf32>
    %c0_3 = arith.constant 0 : index
    %c0_4 = arith.constant 0 : index
    %2 = vector.load %arg3[%c0_3, %c0_4] : memref<1x5xf32, #tpu.memory_space<vmem>>, vector<1x5xf32>
    %cst = arith.constant dense<0.000000e+00> : vector<8x5xf32>
    %3 = tpu.matmul %0, %1, %cst {dimension_numbers = #tpu.dot_dimension_numbers<[1], [1], [0], [0], [0, 0, 1, 0], [], []>} : vector<8x32xf32>, vector<5x32xf32>, vector<8x5xf32> -> vector<8x5xf32>
    %4 = vector.broadcast %2 : vector<1x5xf32> to vector<8x5xf32>
    %5 = arith.addf %3, %4 : vector<8x5xf32>
    %6 = arith.negf %5 : vector<8x5xf32>
    %7 = math.exp %6 : vector<8x5xf32>
    %cst_5 = arith.constant 1.000000e+00 : f32
    %8 = vector.broadcast %cst_5 : f32 to vector<8x5xf32>
    %9 = arith.addf %8, %7 : vector<8x5xf32>
    %10 = arith.divf %8, %9 : vector<8x5xf32>
    %c0_6 = arith.constant 0 : index
    %c0_7 = arith.constant 0 : index
    %11 = vector.load %arg4[%c0_6, %c0_7] : memref<8x5xf32, #tpu.memory_space<vmem>>, vector<8x5xf32>
    tpu.vector_store %arg4[%c0_6, %c0_7], %10 {strides = array<i32>} : memref<8x5xf32, #tpu.memory_space<vmem>>, vector<8x5xf32>,
    return
  }
  func.func @transform_0(%arg0: i32) -> (i32, i32) {
    %c0_i32 = arith.constant 0 : i32
    %c0_i32_0 = arith.constant 0 : i32
    return %arg0, %c0_i32 : i32, i32
  }
  func.func @transform_1(%arg0: i32) -> (i32, i32) {
    %c0_i32 = arith.constant 0 : i32
    %c0_i32_0 = arith.constant 0 : i32
    %c0_i32_1 = arith.constant 0 : i32
    return %c0_i32, %c0_i32_0 : i32, i32
  }
  func.func @transform_2(%arg0: i32) -> (i32, i32) {
    %c0_i32 = arith.constant 0 : i32
    %c0_i32_0 = arith.constant 0 : i32
    %c0_i32_1 = arith.constant 0 : i32
    return %c0_i32, %c0_i32_0 : i32, i32
  }
  func.func @transform_3(%arg0: i32) -> (i32, i32) {
    %c0_i32 = arith.constant 0 : i32
    %c0_i32_0 = arith.constant 0 : i32
    return %arg0, %c0_i32 : i32, i32
  }
}

</mosaic_0001>

<bundles_post_ra>
// kernel: tpu_custom_call.1
= control target key start
LH: loop header
LB: loop body
LE: loop exit
PB: predicated region body
PF: predicated region fallthrough
CT: control target
= control target key end

     0   :  { %8 = vsyncpa [#allocation3], 0  ;;  %s272_s0 = inlined_call_operand.hbm [shape: f32[8,32], index: 0, kind: input, shape index: {}]   ;;  %s273_s1 = inlined_call_operand.hbm [shape: f32[5,32], index: 1, kind: input, shape index: {}]   ;;  %s274_s2 = inlined_call_operand.vmem [shape: f32[1,5], index: 2, kind: input, shape index: {}]   ;;  %s275_s3 = inlined_call_operand.hbm [shape: f32[8,5], index: 3, kind: output, shape index: {}]  }
   0x1   :  { %9 = vsyncpa [#allocation6], 0 }
   0x2   :  { %10 = vsyncpa [#allocation4], 0  ;;  %s235_s12 = smov [#allocation2]   ;;  %s236_s14 = smov [#allocation5]  }
   0x3   :  { %s17_s13 = sshll.u32 %s235_s12, 4  ;;  %s27_s15 = sshll.u32 %s236_s14, 4  ;;  %s18_s13 = int_to_ptr.vmem [resolvable:$true] %s17_s13  ;;  %s28_s15 = int_to_ptr.vmem [resolvable:$true] %s27_s15 }
   0x4   :  { %s177_s16 = scalar_lea.vmem %s18_s13, 128  ;;  %p182_p1 = scmp.lt.s32.totalorder %s18_s13, %s18_s13 }
   0x5   :  { %p178_p0 = scmp.ne.s32.totalorder %s18_s13, %s177_s16  ;;  %p183_p2 = scmp.lt.s32.totalorder %s177_s16, %s177_s16 }
   0x7   :  { %p184_p3 = por %p183_p2, %p182_p1 }
   0x9   :  { %p185_p4 = pnand %p184_p3, %p178_p0 }
   0xb   :  { %188 = shalt.err (!%p185_p4)
}
   0xc   :  { %20 = dma.hbm_to_vmem [thread:$0]  %s272_s0, 128, %s18_s13, [#allocation3]  }
   0xd   :  { %s197_s19 = scalar_lea.vmem %s28_s15, 128  ;;  %p202_p6 = scmp.lt.s32.totalorder %s28_s15, %s28_s15 }
   0xe   :  { %p198_p5 = scmp.ne.s32.totalorder %s28_s15, %s197_s19  ;;  %p203_p7 = scmp.lt.s32.totalorder %s197_s19, %s197_s19 }
  0x10   :  { %p204_p8 = por %p203_p7, %p202_p6 }
  0x12   :  { %p205_p9 = pnand %p204_p8, %p198_p5 }
  0x14   :  { %208 = shalt.err (!%p205_p9)
}
  0x15   :  { %30 = dma.hbm_to_vmem [thread:$0]  %s273_s1, 128, %s28_s15, [#allocation6]  }
  0x16   :  { %229 = dma.done.wait [#allocation3], 128  }
  0x17   :  { %230 = vsyncadd [#allocation3], 4294967168 }
  0x18   :  { %231 = dma.done.wait [#allocation6], 128  }
  0x19   :  { %232 = vsyncadd [#allocation6], 4294967168  ;;  %v237_v0 = vmov 0.0   ;;  %vm238_vm0 = vmmov 0   ;;  %vm48_vm1 = vcmask 261120   ;;  %v39_v2 = vld [vmem:[#allocation2] sm:$0xff] }
  0x1a   :  { %155 = vmatprep.subr.mxu0 %v237_v0  ;;  %157 = vmatprep.mubr.msk.f32.mxu0 %vm238_vm0, %v237_v0  ;;  %v40_v1 = vld [vmem:[#allocation5] sm:$0x1f]  ;;  %v149_v3 = vld [vmem:[%s274_s2] ss:$0 sm:$0xff]  ;;  %s239_s1 = smov [#allocation7]   ;;  %vm131_vm2 = vcmask 39936  }
  0x1b   :  { %156 = vmatpush3.xpose.msk.msra.mxu0 %vm48_vm1, %v40_v1  ;;  %s139_s23 = sshll.u32 %s239_s1, 4  ;;  %s140_s23 = int_to_ptr.vmem [resolvable:$true] %s139_s23 }
  0x1c   :  { %s209_s24 = scalar_lea.vmem %s140_s23, 128  ;;  %p214_p11 = scmp.lt.s32.totalorder %s140_s23, %s140_s23 }
  0x1d   :  { %p210_p10 = scmp.ne.s32.totalorder %s140_s23, %s209_s24  ;;  %p215_p12 = scmp.lt.s32.totalorder %s209_s24, %s209_s24 }
  0x1e   :  { %158 = vmatmul.mubr.msk.f32.vlgmr.msra.gmra.mxu0 %vm48_vm1, %v39_v2 }
  0x1f   :  { %p216_p13 = por %p215_p12, %p214_p11 }
  0x21   :  { %p217_p0 = pnand %p216_p13, %p210_p10 }
  0xde   :  { %v121_v4 = vpop.f32.mrf.mxu0 }
  0xdf   :  { %v122_v5 = vadd.f32 %v149_v3, %v121_v4 }
  0xe0   :  { %v159_v6 = vpop.f32.mrf.mxu0 }
  0xe1   :  { %v152_v7 = vmul.f32 -1.442695, %v122_v5 }
  0xe3   :  { %165 = vpow2.f32 %v152_v7 }
  0xf0   :  { %v166_v8 = vpop.eup %165 }
  0xf1   :  { %v128_v9 = vadd.f32 1.0, %v166_v8 }
  0xf3   :  { %167 = vrcp.f32 %v128_v9 }
 0x100   :  { %v168_v10 = vpop.eup %167 }
 0x101   :  { %132 = vst.msk [vmem:[#allocation7] sm:$0xff] %vm131_vm2, %v168_v10 }
 0x102   :  { %220 = shalt.err (!%p217_p0)
}
 0x103   :  { %142 = dma.vmem_to_hbm [thread:$0]  %s140_s23, 128, %s275_s3, [#allocation4]  }
 0x104   :  { %233 = dma.done.wait [#allocation4], 128  }
 0x105   :  { %234 = vsyncadd [#allocation4], 4294967168 }
 0x106   :  { %146 = vsyncpa [#allocation3], 1 }
 0x107   :  { %147 = vsyncpa [#allocation6], 1 }
 0x108   :  { %148 = vsyncpa [#allocation4], 1 }

</bundles_post_ra>
